<compile_context>
chip_gen: v7x
topology: tpu7x:2x2x1
jax: 0.10.0
libtpu: 0.0.40
codegen_flags: <defaults>
</compile_context>

<pallas_src>
import jax
import jax.numpy as jnp
from jax.experimental import pallas as pl
from jax.experimental.pallas import tpu as pltpu

POOL_SIZE = 3
PAD = POOL_SIZE // 2


def _pooling_kernel(xp_ref, inv_ref, o_ref):
    # xp_ref : (Bn, H+2, W+2, C)  zero-padded input block
    # inv_ref: (1, H, W, 1)       exact 1/count plane (resident across steps)
    # o_ref  : (Bn, H, W, C)
    H = o_ref.shape[1]
    W = o_ref.shape[2]

    # Horizontal 3-tap sums along W (static slices of the padded ref, no masks).
    left = xp_ref[:, :, 0:W, :].astype(jnp.float32)
    center = xp_ref[:, :, 1:W + 1, :].astype(jnp.float32)
    right = xp_ref[:, :, 2:W + 2, :].astype(jnp.float32)
    hs = left + center + right                            # (Bn, H+2, W, C)

    # Vertical 3-tap sums along H.
    acc = hs[:, 0:H] + hs[:, 1:H + 1] + hs[:, 2:H + 2]     # (Bn, H, W, C)

    x = center[:, 1:H + 1]                                 # the original x block
    pooled = acc * inv_ref[...]                            # broadcast over Bn, C
    o_ref[...] = (pooled - x).astype(o_ref.dtype)


def _pick_batch_block(n, plane_bytes, target_bytes=2 << 20):
    """Largest divisor of n with block <= target bytes, keeping >= 2 grid steps."""
    best = 1
    for d in range(1, n + 1):
        if n % d != 0:
            continue
        if d * plane_bytes > target_bytes:
            continue
        if (n // d) < min(2, n):
            continue
        best = max(best, d)
    return best


def pooling_forward(x):
    """x: (N, C, H, W) -> (N, C, H, W), AvgPool3x3(count_include_pad=False)(x) - x."""
    N, C, H, W = x.shape

    # channels-last + zero spatial halo (layout plumbing done once by XLA)
    xt = jnp.transpose(x, (0, 2, 3, 1))                           # (N, H, W, C)
    xp = jnp.pad(xt, ((0, 0), (PAD, PAD), (PAD, PAD), (0, 0)))    # (N, H+2, W+2, C)

    # exact 1/count plane for count_include_pad=False (values 1/4, 1/6, 1/9)
    ri = jnp.arange(H)
    ci = jnp.arange(W)
    row_cnt = jnp.minimum(ri, PAD) + jnp.minimum(H - 1 - ri, PAD) + 1
    col_cnt = jnp.minimum(ci, PAD) + jnp.minimum(W - 1 - ci, PAD) + 1
    cnt = (row_cnt[:, None] * col_cnt[None, :]).astype(jnp.float32)
    inv_cnt = (1.0 / cnt).reshape(1, H, W, 1)

    plane_bytes = (H + 2 * PAD) * (W + 2 * PAD) * C * x.dtype.itemsize
    bn = _pick_batch_block(N, plane_bytes)
    grid = (N // bn,)

    out = pl.pallas_call(
        _pooling_kernel,
        out_shape=jax.ShapeDtypeStruct((N, H, W, C), x.dtype),
        grid_spec=pltpu.PrefetchScalarGridSpec(
            num_scalar_prefetch=0,
            grid=grid,
            in_specs=[
                pl.BlockSpec((bn, H + 2 * PAD, W + 2 * PAD, C),
                             lambda n: (n, 0, 0, 0)),
                pl.BlockSpec((1, H, W, 1), lambda n: (0, 0, 0, 0)),
            ],
            out_specs=pl.BlockSpec((bn, H, W, C), lambda n: (n, 0, 0, 0)),
        ),
        compiler_params=pltpu.CompilerParams(
            dimension_semantics=("parallel",),
            vmem_limit_bytes=32 * 1024 * 1024,
        ),
    )(xp, inv_cnt)

    return jnp.transpose(out, (0, 3, 1, 2))                       # back to NCHW


def _reference(x):
    """Pure-JAX reference matching torch AvgPool2d(count_include_pad=False) - x."""
    N, C, H, W = x.shape
    xpad = jnp.pad(x, ((0, 0), (0, 0), (PAD, PAD), (PAD, PAD)))
    opad = jnp.pad(jnp.ones_like(x), ((0, 0), (0, 0), (PAD, PAD), (PAD, PAD)))
    acc = jnp.zeros_like(x)
    cnt = jnp.zeros_like(x)
    for dy in range(POOL_SIZE):
        for dx in range(POOL_SIZE):
            acc = acc + xpad[:, :, dy:dy + H, dx:dx + W]
            cnt = cnt + opad[:, :, dy:dy + H, dx:dx + W]
    return acc / cnt - x


if __name__ == "__main__":
    key = jax.random.PRNGKey(0)
    x = jax.random.normal(key, (2, 4, 16, 16), dtype=jnp.float32)

    out = pooling_forward(x)
    jax.block_until_ready(out)

    ref = _reference(x)
    assert out.shape == x.shape and out.dtype == x.dtype
    assert jnp.max(jnp.abs(out - ref)) < 1e-5

    print("KERNEL_OK")
</pallas_src>

<mosaic_0001>
module attributes {stable_mosaic.version = 11 : i64} {
  func.func @_pooling_kernel(%arg0: i32, %arg1: memref<1x18x18x4xf32, #tpu.memory_space<vmem>>, %arg2: memref<1x16x16x1xf32, #tpu.memory_space<vmem>>, %arg3: memref<1x16x16x4xf32, #tpu.memory_space<vmem>>) attributes {dimension_semantics = [#tpu.dimension_semantics<parallel>], iteration_bounds = array<i64: 2>, scalar_prefetch = 0 : i64, scratch_operands = 0 : i64, tpu.core_type = #tpu.core_type<tc>, window_params = [{transform_indices = @transform_0, window_bounds = array<i64: 1, 18, 18, 4>}, {pipeline_mode = #tpu.pipeline_mode<synchronous>, transform_indices = @transform_1, window_bounds = array<i64: 1, 16, 16, 1>}, {transform_indices = @transform_2, window_bounds = array<i64: 1, 16, 16, 4>}]} {
    %c0 = arith.constant 0 : index
    %c0_0 = arith.constant 0 : index
    %c0_1 = arith.constant 0 : index
    %c0_2 = arith.constant 0 : index
    %0 = vector.load %arg1[%c0, %c0_0, %c0_1, %c0_2] : memref<1x18x18x4xf32, #tpu.memory_space<vmem>>, vector<1x18x16x4xf32>
    %c0_3 = arith.constant 0 : index
    %c0_4 = arith.constant 0 : index
    %c1 = arith.constant 1 : index
    %c0_5 = arith.constant 0 : index
    %1 = vector.load %arg1[%c0_3, %c0_4, %c1, %c0_5] : memref<1x18x18x4xf32, #tpu.memory_space<vmem>>, vector<1x18x16x4xf32>
    %c0_6 = arith.constant 0 : index
    %c0_7 = arith.constant 0 : index
    %c2 = arith.constant 2 : index
    %c0_8 = arith.constant 0 : index
    %2 = vector.load %arg1[%c0_6, %c0_7, %c2, %c0_8] : memref<1x18x18x4xf32, #tpu.memory_space<vmem>>, vector<1x18x16x4xf32>
    %3 = arith.addf %0, %1 : vector<1x18x16x4xf32>
    %4 = arith.addf %3, %2 : vector<1x18x16x4xf32>
    %5 = vector.extract_strided_slice %4 {offsets = [0, 0, 0, 0], sizes = [1, 16, 16, 4], strides = [1, 1, 1, 1]} : vector<1x18x16x4xf32> to vector<1x16x16x4xf32>
    %6 = vector.extract_strided_slice %4 {offsets = [0, 1, 0, 0], sizes = [1, 16, 16, 4], strides = [1, 1, 1, 1]} : vector<1x18x16x4xf32> to vector<1x16x16x4xf32>
    %7 = arith.addf %5, %6 : vector<1x16x16x4xf32>
    %8 = vector.extract_strided_slice %4 {offsets = [0, 2, 0, 0], sizes = [1, 16, 16, 4], strides = [1, 1, 1, 1]} : vector<1x18x16x4xf32> to vector<1x16x16x4xf32>
    %9 = arith.addf %7, %8 : vector<1x16x16x4xf32>
    %10 = vector.extract_strided_slice %1 {offsets = [0, 1, 0, 0], sizes = [1, 16, 16, 4], strides = [1, 1, 1, 1]} : vector<1x18x16x4xf32> to vector<1x16x16x4xf32>
    %c0_9 = arith.constant 0 : index
    %c0_10 = arith.constant 0 : index
    %c0_11 = arith.constant 0 : index
    %c0_12 = arith.constant 0 : index
    %11 = vector.load %arg2[%c0_9, %c0_10, %c0_11, %c0_12] : memref<1x16x16x1xf32, #tpu.memory_space<vmem>>, vector<1x16x16x1xf32>
    %12 = vector.broadcast %11 : vector<1x16x16x1xf32> to vector<1x16x16x4xf32>
    %13 = arith.mulf %9, %12 : vector<1x16x16x4xf32>
    %14 = arith.subf %13, %10 : vector<1x16x16x4xf32>
    %c0_13 = arith.constant 0 : index
    %c0_14 = arith.constant 0 : index
    %c0_15 = arith.constant 0 : index
    %c0_16 = arith.constant 0 : index
    %15 = vector.load %arg3[%c0_13, %c0_14, %c0_15, %c0_16] : memref<1x16x16x4xf32, #tpu.memory_space<vmem>>, vector<1x16x16x4xf32>
    tpu.vector_store %arg3[%c0_13, %c0_14, %c0_15, %c0_16], %14 {strides = array<i32>} : memref<1x16x16x4xf32, #tpu.memory_space<vmem>>, vector<1x16x16x4xf32>,
    return
  }
  func.func @transform_0(%arg0: i32) -> (i32, i32, i32, i32) {
    %c0_i32 = arith.constant 0 : i32
    %c0_i32_0 = arith.constant 0 : i32
    %c0_i32_1 = arith.constant 0 : i32
    %c0_i32_2 = arith.constant 0 : i32
    return %arg0, %c0_i32, %c0_i32_0, %c0_i32_1 : i32, i32, i32, i32
  }
  func.func @transform_1(%arg0: i32) -> (i32, i32, i32, i32) {
    %c0_i32 = arith.constant 0 : i32
    %c0_i32_0 = arith.constant 0 : i32
    %c0_i32_1 = arith.constant 0 : i32
    %c0_i32_2 = arith.constant 0 : i32
    %c0_i32_3 = arith.constant 0 : i32
    return %c0_i32, %c0_i32_0, %c0_i32_1, %c0_i32_2 : i32, i32, i32, i32
  }
  func.func @transform_2(%arg0: i32) -> (i32, i32, i32, i32) {
    %c0_i32 = arith.constant 0 : i32
    %c0_i32_0 = arith.constant 0 : i32
    %c0_i32_1 = arith.constant 0 : i32
    %c0_i32_2 = arith.constant 0 : i32
    return %arg0, %c0_i32, %c0_i32_0, %c0_i32_1 : i32, i32, i32, i32
  }
}

</mosaic_0001>

<bundles_post_ra>
// kernel: tpu_custom_call.1
= control target key start
LH: loop header
LB: loop body
LE: loop exit
PB: predicated region body
PF: predicated region fallthrough
CT: control target
= control target key end

     0   :  { %s779_s9 = smov 0   ;;  %s1204_s0 = inlined_call_operand.vmem [shape: f32[2,18,18,4], index: 0, kind: input, shape index: {}]   ;;  %s1205_s1 = inlined_call_operand.vmem [shape: f32[1,16,16,1], index: 1, kind: input, shape index: {}]   ;;  %s1206_s2 = inlined_call_operand.vmem [shape: f32[2,16,16,4], index: 2, kind: output, shape index: {}]  }
   0x1 LB: > { %s732_s10 = sadd.s32 4294967295, %s761_s9   ;;  %p736_p0 = scmp.ge.s32.totalorder %s761_s9, 1  ;;  %s761_s9 = sphi %s779_s9, %s12_s9  }
   0x2   : > { %p112_p1 = scmp.lt.s32.totalorder %s761_s9, 3 }
   0x4   : > { %p113_p2 = pnand %p736_p0, %p112_p1 }
   0x5   : > { %v390_v0 = vld [vmem:[%s1205_s1 + $0x10] sm:$0xff] (!%p113_p2)  ;;  %v388_v1 = vld [vmem:[%s1205_s1] sm:$0xff] (!%p113_p2)  ;;  %v763_v2 = vmov (!%p113_p2), 0   ;;  %v391_v3 = vld [vmem:[%s1205_s1 + $0x18] sm:$0xff] (!%p113_p2)  ;;  %p134_p3 = scmp.lt.s32.totalorder (!%p113_p2), %s732_s10, 1  ;;  %vm644_vm0 = vcmask (!%p113_p2), 31744  }
   0x6   : > { %116 = sbr.rel (%p113_p2) target bundleno = 200 (0xc8), region = 28  ;;  %754 = vset.pattern.permute.xlu1 (!%p113_p2), %v763_v2  ;;  %753 = vset.pattern.permute.xlu0 (!%p113_p2), %v763_v2  ;;  %v389_v4 = vld [vmem:[%s1205_s1 + $0x8] sm:$0xff] (!%p113_p2)  ;;  %v392_v6 = vld [vmem:[%s1205_s1 + $0x20] sm:$0xff] (!%p113_p2)  ;;  %v395_v7 = vld [vmem:[%s1205_s1 + $0x38] sm:$0xff] (!%p113_p2) }
   0x7   : > { %432 = vperm.xlu1 (!%p113_p2), %754, %v390_v0   ;;  %422 = vperm.xlu0 (!%p113_p2), %753, %v388_v1   ;;  %v393_v5 = vld [vmem:[%s1205_s1 + $0x28] sm:$0xff] (!%p113_p2)  ;;  %v394_v8 = vld [vmem:[%s1205_s1 + $0x30] sm:$0xff] (!%p113_p2)  ;;  %v396_v10 = vld [vmem:[%s1205_s1 + $0x40] sm:$0xff] (!%p113_p2) }
   0x8   : > { %v397_v9 = vld [vmem:[%s1205_s1 + $0x48] sm:$0xff] (!%p113_p2)  ;;  %v399_v11 = vld [vmem:[%s1205_s1 + $0x58] sm:$0xff] (!%p113_p2)  ;;  %v398_v12 = vld [vmem:[%s1205_s1 + $0x50] sm:$0xff] (!%p113_p2) }
   0x9   : > { %v401_v13 = vld [vmem:[%s1205_s1 + $0x68] sm:$0xff] (!%p113_p2)  ;;  %v400_v14 = vld [vmem:[%s1205_s1 + $0x60] sm:$0xff] (!%p113_p2)  ;;  %v403_v15 = vld [vmem:[%s1205_s1 + $0x78] sm:$0xff] (!%p113_p2) }
   0xa   : > { %v402_v16 = vld [vmem:[%s1205_s1 + $0x70] sm:$0xff] (!%p113_p2)  ;;  %v405_v17 = vld [vmem:[%s1205_s1 + $0x88] sm:$0xff] (!%p113_p2)  ;;  %v404_v18 = vld [vmem:[%s1205_s1 + $0x80] sm:$0xff] (!%p113_p2) }
   0xb   : > { %437 = vperm.xlu1 (!%p113_p2), %754, %v391_v3   ;;  %427 = vperm.xlu0 (!%p113_p2), %753, %v389_v4   ;;  %v407_v19 = vld [vmem:[%s1205_s1 + $0x98] sm:$0xff] (!%p113_p2)  ;;  %v406_v20 = vld [vmem:[%s1205_s1 + $0x90] sm:$0xff] (!%p113_p2)  ;;  %v409_v21 = vld [vmem:[%s1205_s1 + $0xa8] sm:$0xff] (!%p113_p2) }
   0xc   : > { %v408_v22 = vld [vmem:[%s1205_s1 + $0xa0] sm:$0xff] (!%p113_p2)  ;;  %v411_v23 = vld [vmem:[%s1205_s1 + $0xb8] sm:$0xff] (!%p113_p2)  ;;  %v410_v24 = vld [vmem:[%s1205_s1 + $0xb0] sm:$0xff] (!%p113_p2) }
   0xd   : > { %v413_v25 = vld [vmem:[%s1205_s1 + $0xc8] sm:$0xff]  ;;  %v412_v26 = vld [vmem:[%s1205_s1 + $0xc0] sm:$0xff]  ;;  %v415_v27 = vld [vmem:[%s1205_s1 + $0xd8] sm:$0xff]  ;;  %s1208_s10 = smov (!%p134_p3, %s732_s10), 1 }
   0xe   : > { %v414_v28 = vld [vmem:[%s1205_s1 + $0xd0] sm:$0xff]  ;;  %v417_v29 = vld [vmem:[%s1205_s1 + $0xe8] sm:$0xff]  ;;  %v416_v30 = vld [vmem:[%s1205_s1 + $0xe0] sm:$0xff]  ;;  %s743_s23 = smul.u32 432, %s1208_s10  ;;  %s742_s27 = sshll.u32 %s1208_s10, 8 }
   0xf   : > { %447 = vperm.xlu1 %754, %v393_v5   ;;  %442 = vperm.xlu0 %753, %v392_v6   ;;  %v419_v31 = vld [vmem:[%s1205_s1 + $0xf8] sm:$0xff]  ;;  %v418_v32 = vld [vmem:[%s1205_s1 + $0xf0] sm:$0xff]  ;;  %s969_s29 = scalar_lea.vmem %s1206_s2, %s742_s27 }
  0x10   : > { %s893_s26 = scalar_lea.vmem %s1204_s0, %s743_s23 }
  0x11   : > { %v146_v33 = vld [vmem:[%s893_s26 + $0x18] sm:$0xff]  ;;  %v148_v34 = vld [vmem:[%s893_s26 + $0x30] sm:$0xff]  ;;  %v144_v37 = vld [vmem:[%s893_s26] sm:$0xff] }
  0x12   : > { %v898_v35 = vld [vmem:[%s893_s26 + $0x19] sm:$0xff]  ;;  %v901_v36 = vld [vmem:[%s893_s26 + $0x31] sm:$0xff]  ;;  %v180_v38 = vld [vmem:[%s893_s26 + $0x1] sm:$0xff] }
  0x13   : > { %457 = vperm.xlu1 %754, %v395_v7   ;;  %452 = vperm.xlu0 %753, %v394_v8   ;;  %v150_v39 = vld [vmem:[%s893_s26 + $0x48] sm:$0xff]  ;;  %v218_v41 = vld [vmem:[%s893_s26 + $0x1a] sm:$0xff]  ;;  %v220_v42 = vld [vmem:[%s893_s26 + $0x32] sm:$0xff]  ;;  %v254_v44 = vadd.f32 %v898_v35, %v146_v33  ;;  %v256_v45 = vadd.f32 %v901_v36, %v148_v34  ;;  %v252_v46 = vadd.f32 %v180_v38, %v144_v37 }
  0x14   : > { %v907_v40 = vld [vmem:[%s893_s26 + $0x49] sm:$0xff]  ;;  %v147_v43 = vld [vmem:[%s893_s26 + $0x20] sm:$0xff]  ;;  %v149_v47 = vld [vmem:[%s893_s26 + $0x38] sm:$0xff] }
  0x15   : > { %v916_v48 = vld [vmem:[%s893_s26 + $0x21] sm:$0xff]  ;;  %v919_v49 = vld [vmem:[%s893_s26 + $0x39] sm:$0xff]  ;;  %v181_v52 = vld [vmem:[%s893_s26 + $0x9] sm:$0xff]  ;;  %v258_v53 = vadd.f32 %v907_v40, %v150_v39  ;;  %v290_v57 = vadd.f32 %v254_v44, %v218_v41  ;;  %v292_v58 = vadd.f32 %v256_v45, %v220_v42 }
  0x16   : > { %v216_v50 = vld [vmem:[%s893_s26 + $0x2] sm:$0xff]  ;;  %v151_v54 = vld [vmem:[%s893_s26 + $0x50] sm:$0xff]  ;;  %v255_v55 = vadd.f32 %v916_v48, %v147_v43  ;;  %v257_v56 = vadd.f32 %v919_v49, %v149_v47  ;;  %v221_v62 = vld [vmem:[%s893_s26 + $0x3a] sm:$0xff] }
  0x17   : > { %467 = vperm.xlu1 %754, %v397_v9   ;;  %462 = vperm.xlu0 %753, %v396_v10   ;;  %v145_v51 = vld [vmem:[%s893_s26 + $0x8] sm:$0xff]  ;;  %v288_v59 = vadd.f32 %v252_v46, %v216_v50  ;;  %v929_v60 = vld [vmem:[%s893_s26 + $0x51] sm:$0xff]  ;;  %v326_v8 = vadd.f32 %v292_v58, %v290_v57  ;;  %v962_v38 = vld [vmem:[%s893_s26 + $0x99] sm:$0xff] }
  0x18   : > { %v219_v61 = vld [vmem:[%s893_s26 + $0x22] sm:$0xff]  ;;  %v253_v63 = vadd.f32 %v181_v52, %v145_v51  ;;  %v222_v0 = vld [vmem:[%s893_s26 + $0x4a] sm:$0xff]  ;;  %v259_v2 = vadd.f32 %v929_v60, %v151_v54  ;;  %v293_v4 = vadd.f32 %v257_v56, %v221_v62  ;;  %v223_v10 = vld [vmem:[%s893_s26 + $0x52] sm:$0xff] }
  0x19   : > { %v217_v1 = vld [vmem:[%s893_s26 + $0xa] sm:$0xff]  ;;  %v291_v3 = vadd.f32 %v255_v55, %v219_v61  ;;  %v294_v7 = vadd.f32 %v258_v53, %v222_v0  ;;  %v324_v9 = vadd.f32 %v290_v57, %v288_v59  ;;  %v157_v37 = vld [vmem:[%s893_s26 + $0x98] sm:$0xff]  ;;  %v227_v44 = vld [vmem:[%s893_s26 + $0x82] sm:$0xff] }
  0x1a   : > { %v153_v5 = vld [vmem:[%s893_s26 + $0x68] sm:$0xff]  ;;  %v226_v45 = vld [vmem:[%s893_s26 + $0x7a] sm:$0xff]  ;;  %v156_v46 = vld [vmem:[%s893_s26 + $0x90] sm:$0xff]  ;;  %v265_v53 = vadd.f32 %v962_v38, %v157_v37 }
  0x1b   : > { %477 = vperm.xlu1 %754, %v399_v11   ;;  %472 = vperm.xlu0 %753, %v398_v12   ;;  %v938_v6 = vld [vmem:[%s893_s26 + $0x69] sm:$0xff]  ;;  %v289_v11 = vadd.f32 %v253_v63, %v217_v1  ;;  %v152_v12 = vld [vmem:[%s893_s26 + $0x60] sm:$0xff]  ;;  %v973_v47 = vld [vmem:[%s893_s26 + $0x91] sm:$0xff] }
  0x1c   : > { %v229_v61 = vld [vmem:[%s893_s26 + $0x9a] sm:$0xff]  ;;  %v159_v62 = vld [vmem:[%s893_s26 + $0xb0] sm:$0xff]  ;;  %v264_v0 = vadd.f32 %v973_v47, %v156_v46  ;;  %v232_v46 = vld [vmem:[%s893_s26 + $0xc2] sm:$0xff] }
  0x1d   : > { %v986_v1 = vld [vmem:[%s893_s26 + $0xb1] sm:$0xff] }
  0x1f   : > { %487 = vperm.xlu1 %754, %v401_v13   ;;  %482 = vperm.xlu0 %753, %v400_v14   ;;  %v943_v13 = vld [vmem:[%s893_s26 + $0x61] sm:$0xff]  ;;  %v261_v14 = vadd.f32 %v938_v6, %v153_v5 }
  0x23   : > { %497 = vperm.xlu1 %754, %v403_v15   ;;  %492 = vperm.xlu0 %753, %v402_v16   ;;  %v295_v15 = vadd.f32 %v259_v2, %v223_v10  ;;  %v327_v16 = vadd.f32 %v293_v4, %v291_v3  ;;  %v158_v2 = vld [vmem:[%s893_s26 + $0xa8] sm:$0xff] }
  0x27   : > { %507 = vperm.xlu1 %754, %v405_v17   ;;  %502 = vperm.xlu0 %753, %v404_v18   ;;  %v225_v17 = vld [vmem:[%s893_s26 + $0x6a] sm:$0xff]  ;;  %v155_v18 = vld [vmem:[%s893_s26 + $0x80] sm:$0xff] }
  0x2b   : > { %517 = vperm.xlu1 %754, %v407_v19   ;;  %512 = vperm.xlu0 %753, %v406_v20   ;;  %v358_v19 = vadd.f32 %v326_v8, %v294_v7  ;;  %v356_v20 = vadd.f32 %v324_v9, %v292_v58  ;;  %v301_v8 = vadd.f32 %v265_v53, %v229_v61 }
  0x2f   : > { %527 = vperm.xlu1 %754, %v409_v21   ;;  %522 = vperm.xlu0 %753, %v408_v22   ;;  %v325_v21 = vadd.f32 %v291_v3, %v289_v11  ;;  %v260_v22 = vadd.f32 %v943_v13, %v152_v12  ;;  %v990_v3 = vld [vmem:[%s893_s26 + $0xa9] sm:$0xff] }
  0x31   : > { %v357_v42 = vadd.f32 %v325_v21, %v293_v4 }
  0x33   : > { %537 = vperm.xlu1 %754, %v411_v23   ;;  %532 = vperm.xlu0 %753, %v410_v24   ;;  %v950_v23 = vld [vmem:[%s893_s26 + $0x81] sm:$0xff]  ;;  %v154_v24 = vld [vmem:[%s893_s26 + $0x78] sm:$0xff] }
  0x34   : > { %v263_v33 = vadd.f32 %v950_v23, %v155_v18  ;;  %v161_v18 = vld [vmem:[%s893_s26 + $0xc8] sm:$0xff] }
  0x36   : > { %v299_v56 = vadd.f32 %v263_v33, %v227_v44 }
  0x37   : > { %547 = vperm.xlu1 %754, %v413_v25   ;;  %542 = vperm.xlu0 %753, %v412_v26   ;;  %v954_v25 = vld [vmem:[%s893_s26 + $0x79] sm:$0xff]  ;;  %v224_v26 = vld [vmem:[%s893_s26 + $0x62] sm:$0xff] }
  0x38   : > { %v262_v34 = vadd.f32 %v954_v25, %v154_v24  ;;  %v296_v43 = vadd.f32 %v260_v22, %v224_v26  ;;  %v230_v22 = vld [vmem:[%s893_s26 + $0xaa] sm:$0xff]  ;;  %v160_v24 = vld [vmem:[%s893_s26 + $0xc0] sm:$0xff] }
  0x39   : > { %v1009_v26 = vld [vmem:[%s893_s26 + $0xc1] sm:$0xff] }
  0x3a   : > { %v330_v59 = vadd.f32 %v296_v43, %v294_v7 }
  0x3b   : > { %557 = vperm.xlu1 %754, %v415_v27   ;;  %552 = vperm.xlu0 %753, %v414_v28   ;;  %v297_v27 = vadd.f32 %v261_v14, %v225_v17  ;;  %v329_v28 = vadd.f32 %v295_v15, %v293_v4  ;;  %v228_v4 = vld [vmem:[%s893_s26 + $0x92] sm:$0xff]  ;;  %v266_v17 = vadd.f32 %v990_v3, %v158_v2 }
  0x3c   : > { %v1040_v2 = vld [vmem:[%s893_s26 + $0xf9] sm:$0xff] }
  0x3d   : > { %v361_v52 = vadd.f32 %v329_v28, %v297_v27  ;;  %v331_v57 = vadd.f32 %v297_v27, %v295_v15  ;;  %v333_v9 = vadd.f32 %v299_v56, %v297_v27  ;;  %v302_v37 = vadd.f32 %v266_v17, %v230_v22  ;;  %v237_v17 = vld [vmem:[%s893_s26 + $0xfa] sm:$0xff]  ;;  %v167_v22 = vld [vmem:[%s893_s26 + $0x110] sm:$0xff] }
  0x3f   : > { %567 = vperm.xlu1 %754, %v417_v29   ;;  %562 = vperm.xlu0 %753, %v416_v30   ;;  %v363_v12 = vadd.f32 %v331_v57, %v299_v56 }
  0x43   : > { %577 = vperm.xlu1 %754, %v419_v31   ;;  %572 = vperm.xlu0 %753, %v418_v32   ;;  %v359_v31 = vadd.f32 %v327_v16, %v295_v15  ;;  %v328_v32 = vadd.f32 %v294_v7, %v292_v58  ;;  %v298_v58 = vadd.f32 %v262_v34, %v226_v45  ;;  %v231_v15 = vld [vmem:[%s893_s26 + $0xb2] sm:$0xff] }
  0x44   : > { %v267_v16 = vadd.f32 %v986_v1, %v159_v62  ;;  %v335_v34 = vadd.f32 %v301_v8, %v299_v56 }
  0x45   : > { %v360_v63 = vadd.f32 %v328_v32, %v296_v43  ;;  %v362_v14 = vadd.f32 %v330_v59, %v298_v58  ;;  %v332_v21 = vadd.f32 %v298_v58, %v296_v43  ;;  %v1018_v43 = vld [vmem:[%s893_s26 + $0xe1] sm:$0xff] }
  0x46   : > { %v303_v33 = vadd.f32 %v267_v16, %v231_v15 }
  0x48   : > { %v337_v59 = vadd.f32 %v303_v33, %v301_v8 }
  0x86   : > { %v433_v29 = vpop.permute.xlu1 %432  ;;  %v423_v30 = vpop.permute.xlu0 %422 }
  0x87   : > { %v582_v39 = vmul.f32 %v433_v29, %v358_v19  ;;  %v580_v41 = vmul.f32 %v423_v30, %v356_v20  ;;  %v1000_v19 = vld [vmem:[%s893_s26 + $0xc9] sm:$0xff]  ;;  %v300_v20 = vadd.f32 %v264_v0, %v228_v4  ;;  %v365_v29 = vadd.f32 %v333_v9, %v301_v8 }
  0x88   : > { %v269_v30 = vadd.f32 %v1000_v19, %v161_v18  ;;  %v164_v4 = vld [vmem:[%s893_s26 + $0xf0] sm:$0xff] }
  0x89   : > { %v614_v50 = vsub.f32 %v582_v39, %v901_v36  ;;  %v612_v51 = vsub.f32 %v580_v41, %v898_v35  ;;  %v233_v39 = vld [vmem:[%s893_s26 + $0xca] sm:$0xff]  ;;  %v268_v41 = vadd.f32 %v1009_v26, %v160_v24  ;;  %v364_v44 = vadd.f32 %v332_v21, %v300_v20  ;;  %v236_v21 = vld [vmem:[%s893_s26 + $0xf2] sm:$0xff] }
  0x8a   : > { %v438_v54 = vpop.permute.xlu1 %437  ;;  %v428_v55 = vpop.permute.xlu0 %427  ;;  %v334_v45 = vadd.f32 %v300_v20, %v298_v58  ;;  %v367_v58 = vadd.f32 %v335_v34, %v303_v33  ;;  %v336_v62 = vadd.f32 %v302_v37, %v300_v20  ;;  %v1059_v24 = vld [vmem:[%s893_s26 + $0x111] sm:$0xff] }
  0x8b   : > { %647 = vst.msk [vmem:[%s969_s29 + $0x10] sm:$0xff] %vm644_vm0, %v614_v50  ;;  %645 = vst.msk [vmem:[%s969_s29] sm:$0xff] %vm644_vm0, %v612_v51  ;;  %v583_v35 = vmul.f32 %v438_v54, %v359_v31  ;;  %v581_v36 = vmul.f32 %v428_v55, %v357_v42  ;;  %v163_v42 = vld [vmem:[%s893_s26 + $0xe0] sm:$0xff]  ;;  %v162_v50 = vld [vmem:[%s893_s26 + $0xd8] sm:$0xff]  ;;  %v305_v54 = vadd.f32 %v269_v30, %v233_v39 }
  0x8c   : > { %v1027_v51 = vld [vmem:[%s893_s26 + $0xd9] sm:$0xff]  ;;  %v271_v55 = vadd.f32 %v1018_v43, %v163_v42  ;;  %v304_v61 = vadd.f32 %v268_v41, %v232_v46 }
  0x8d   : > { %v615_v5 = vsub.f32 %v583_v35, %v919_v49  ;;  %v613_v7 = vsub.f32 %v581_v36, %v916_v48  ;;  %v235_v35 = vld [vmem:[%s893_s26 + $0xe2] sm:$0xff]  ;;  %v165_v36 = vld [vmem:[%s893_s26 + $0xf8] sm:$0xff]  ;;  %v270_v0 = vadd.f32 %v1027_v51, %v162_v50  ;;  %v369_v15 = vadd.f32 %v337_v59, %v305_v54 }
  0x8e   : > { %v448_v10 = vpop.permute.xlu1 %447  ;;  %v443_v11 = vpop.permute.xlu0 %442  ;;  %v338_v16 = vadd.f32 %v304_v61, %v302_v37  ;;  %v273_v18 = vadd.f32 %v1040_v2, %v165_v36  ;;  %v239_v50 = vld [vmem:[%s893_s26 + $0x112] sm:$0xff] }
  0x8f   : > { %648 = vst.msk [vmem:[%s969_s29 + $0x18] sm:$0xff] %vm644_vm0, %v615_v5  ;;  %646 = vst.msk [vmem:[%s969_s29 + $0x8] sm:$0xff] %vm644_vm0, %v613_v7  ;;  %v585_v48 = vmul.f32 %v448_v10, %v361_v52  ;;  %v584_v49 = vmul.f32 %v443_v11, %v360_v63  ;;  %v366_v63 = vadd.f32 %v334_v45, %v302_v37  ;;  %v1044_v5 = vld [vmem:[%s893_s26 + $0xf1] sm:$0xff]  ;;  %v234_v7 = vld [vmem:[%s893_s26 + $0xda] sm:$0xff] }
  0x90   : > { %v307_v10 = vadd.f32 %v271_v55, %v235_v35  ;;  %v339_v11 = vadd.f32 %v305_v54, %v303_v33  ;;  %v306_v20 = vadd.f32 %v270_v0, %v234_v7  ;;  %v169_v33 = vld [vmem:[%s893_s26 + $0x128] sm:$0xff]  ;;  %v309_v39 = vadd.f32 %v273_v18, %v237_v17 }
  0x91   : > { %v617_v27 = vsub.f32 %v585_v48, %v929_v60  ;;  %v616_v28 = vsub.f32 %v584_v49, %v907_v40  ;;  %v272_v48 = vadd.f32 %v1044_v5, %v164_v4  ;;  %v368_v49 = vadd.f32 %v336_v62, %v304_v61  ;;  %v1074_v45 = vld [vmem:[%s893_s26 + $0x121] sm:$0xff] }
  0x92   : > { %v458_v31 = vpop.permute.xlu1 %457  ;;  %v453_v32 = vpop.permute.xlu0 %452  ;;  %v340_v42 = vadd.f32 %v306_v20, %v304_v61  ;;  %v370_v46 = vadd.f32 %v338_v16, %v306_v20  ;;  %v343_v36 = vadd.f32 %v309_v39, %v307_v10  ;;  %v240_v7 = vld [vmem:[%s893_s26 + $0x122] sm:$0xff] }
  0x93   : > { %650 = vst.msk [vmem:[%s969_s29 + $0x28] sm:$0xff] %vm644_vm0, %v617_v27  ;;  %649 = vst.msk [vmem:[%s969_s29 + $0x20] sm:$0xff] %vm644_vm0, %v616_v28  ;;  %v587_v40 = vmul.f32 %v458_v31, %v363_v12  ;;  %v586_v60 = vmul.f32 %v453_v32, %v362_v14  ;;  %v166_v27 = vld [vmem:[%s893_s26 + $0x108] sm:$0xff]  ;;  %v371_v31 = vadd.f32 %v339_v11, %v307_v10 }
  0x94   : > { %v1063_v28 = vld [vmem:[%s893_s26 + $0x109] sm:$0xff]  ;;  %v341_v32 = vadd.f32 %v307_v10, %v305_v54  ;;  %v308_v41 = vadd.f32 %v272_v48, %v236_v21 }
  0x95   : > { %v619_v52 = vsub.f32 %v587_v40, %v938_v6  ;;  %v618_v53 = vsub.f32 %v586_v60, %v943_v13  ;;  %v275_v40 = vadd.f32 %v1059_v24, %v167_v22  ;;  %v1070_v60 = vld [vmem:[%s893_s26 + $0x129] sm:$0xff]  ;;  %v1112_v22 = vld [vmem:[%s893_s26 + $0x159] sm:$0xff] }
  0x96   : > { %v468_v56 = vpop.permute.xlu1 %467  ;;  %v463_v57 = vpop.permute.xlu0 %462  ;;  %v373_v61 = vadd.f32 %v341_v32, %v309_v39  ;;  %v372_v62 = vadd.f32 %v340_v42, %v308_v41  ;;  %v342_v4 = vadd.f32 %v308_v41, %v306_v20 }
  0x97   : > { %652 = vst.msk [vmem:[%s969_s29 + $0x38] sm:$0xff] %vm644_vm0, %v619_v52  ;;  %651 = vst.msk [vmem:[%s969_s29 + $0x30] sm:$0xff] %vm644_vm0, %v618_v53  ;;  %v589_v6 = vmul.f32 %v468_v56, %v365_v29  ;;  %v588_v13 = vmul.f32 %v463_v57, %v364_v44  ;;  %v168_v44 = vld [vmem:[%s893_s26 + $0x120] sm:$0xff]  ;;  %v274_v52 = vadd.f32 %v1063_v28, %v166_v27  ;;  %v238_v53 = vld [vmem:[%s893_s26 + $0x10a] sm:$0xff] }
  0x98   : > { %v277_v56 = vadd.f32 %v1070_v60, %v169_v33  ;;  %v276_v57 = vadd.f32 %v1074_v45, %v168_v44  ;;  %v311_v35 = vadd.f32 %v275_v40, %v239_v50  ;;  %v172_v27 = vld [vmem:[%s893_s26 + $0x150] sm:$0xff] }
  0x99   : > { %v621_v8 = vsub.f32 %v589_v6, %v950_v23  ;;  %v620_v9 = vsub.f32 %v588_v13, %v954_v25  ;;  %v241_v6 = vld [vmem:[%s893_s26 + $0x12a] sm:$0xff]  ;;  %v171_v13 = vld [vmem:[%s893_s26 + $0x140] sm:$0xff]  ;;  %v310_v0 = vadd.f32 %v274_v52, %v238_v53  ;;  %v244_v53 = vld [vmem:[%s893_s26 + $0x152] sm:$0xff] }
  0x9a   : > { %v478_v12 = vpop.permute.xlu1 %477  ;;  %v473_v14 = vpop.permute.xlu0 %472  ;;  %v375_v17 = vadd.f32 %v343_v36, %v311_v35  ;;  %v345_v18 = vadd.f32 %v311_v35, %v309_v39  ;;  %v312_v48 = vadd.f32 %v276_v57, %v240_v7  ;;  %v1123_v39 = vld [vmem:[%s893_s26 + $0x171] sm:$0xff]  ;;  %v245_v52 = vld [vmem:[%s893_s26 + $0x15a] sm:$0xff] }
  0x9b   : > { %654 = vst.msk [vmem:[%s969_s29 + $0x48] sm:$0xff] %vm644_vm0, %v621_v8  ;;  %653 = vst.msk [vmem:[%s969_s29 + $0x40] sm:$0xff] %vm644_vm0, %v620_v9  ;;  %v591_v23 = vmul.f32 %v478_v12, %v367_v58  ;;  %v590_v25 = vmul.f32 %v473_v14, %v366_v63  ;;  %v1090_v63 = vld [vmem:[%s893_s26 + $0x141] sm:$0xff]  ;;  %v170_v8 = vld [vmem:[%s893_s26 + $0x138] sm:$0xff]  ;;  %v313_v12 = vadd.f32 %v277_v56, %v241_v6 }
  0x9c   : > { %v1099_v9 = vld [vmem:[%s893_s26 + $0x139] sm:$0xff]  ;;  %v279_v14 = vadd.f32 %v1090_v63, %v171_v13  ;;  %v374_v20 = vadd.f32 %v342_v4, %v310_v0  ;;  %v346_v50 = vadd.f32 %v312_v48, %v310_v0  ;;  %v1136_v56 = vld [vmem:[%s893_s26 + $0x169] sm:$0xff] }
  0x9d   : > { %v623_v29 = vsub.f32 %v591_v23, %v962_v38  ;;  %v622_v30 = vsub.f32 %v590_v25, %v973_v47  ;;  %v344_v23 = vadd.f32 %v310_v0, %v308_v41  ;;  %v243_v25 = vld [vmem:[%s893_s26 + $0x142] sm:$0xff]  ;;  %v278_v21 = vadd.f32 %v1099_v9, %v170_v8 }
  0x9e   : > { %v488_v34 = vpop.permute.xlu1 %487  ;;  %v483_v37 = vpop.permute.xlu0 %482  ;;  %v315_v33 = vadd.f32 %v279_v14, %v243_v25  ;;  %v377_v40 = vadd.f32 %v345_v18, %v313_v12  ;;  %v1143_v0 = vld [vmem:[%s893_s26 + $0x189] sm:$0xff]  ;;  %v176_v8 = vld [vmem:[%s893_s26 + $0x180] sm:$0xff] }
  0x9f   : > { %656 = vst.msk [vmem:[%s969_s29 + $0x58] sm:$0xff] %vm644_vm0, %v623_v29  ;;  %655 = vst.msk [vmem:[%s969_s29 + $0x50] sm:$0xff] %vm644_vm0, %v622_v30  ;;  %v593_v38 = vmul.f32 %v488_v34, %v369_v15  ;;  %v592_v47 = vmul.f32 %v483_v37, %v368_v49  ;;  %v173_v49 = vld [vmem:[%s893_s26 + $0x158] sm:$0xff]  ;;  %v347_v34 = vadd.f32 %v313_v12, %v311_v35  ;;  %v175_v37 = vld [vmem:[%s893_s26 + $0x170] sm:$0xff] }
  0xa0   : > { %v1116_v29 = vld [vmem:[%s893_s26 + $0x151] sm:$0xff]  ;;  %v242_v30 = vld [vmem:[%s893_s26 + $0x13a] sm:$0xff]  ;;  %v376_v44 = vadd.f32 %v344_v23, %v312_v48  ;;  %v349_v6 = vadd.f32 %v315_v33, %v313_v12 }
  0xa1   : > { %v625_v54 = vsub.f32 %v593_v38, %v986_v1  ;;  %v624_v55 = vsub.f32 %v592_v47, %v990_v3  ;;  %v281_v38 = vadd.f32 %v1112_v22, %v173_v49  ;;  %v246_v12 = vld [vmem:[%s893_s26 + $0x16a] sm:$0xff] }
  0xa2   : > { %v498_v58 = vpop.permute.xlu1 %497  ;;  %v493_v59 = vpop.permute.xlu0 %492  ;;  %v249_v49 = vld [vmem:[%s893_s26 + $0x18a] sm:$0xff] }
  0xa3   : > { %658 = vst.msk [vmem:[%s969_s29 + $0x68] sm:$0xff] %vm644_vm0, %v625_v54  ;;  %657 = vst.msk [vmem:[%s969_s29 + $0x60] sm:$0xff] %vm644_vm0, %v624_v55  ;;  %v595_v1 = vmul.f32 %v498_v58, %v371_v31  ;;  %v594_v3 = vmul.f32 %v493_v59, %v370_v46  ;;  %v314_v46 = vadd.f32 %v278_v21, %v242_v30  ;;  %v174_v55 = vld [vmem:[%s893_s26 + $0x168] sm:$0xff] }
  0xa4   : > { %v283_v54 = vadd.f32 %v1123_v39, %v175_v37  ;;  %v379_v59 = vadd.f32 %v347_v34, %v315_v33  ;;  %v317_v36 = vadd.f32 %v281_v38, %v245_v52  ;;  %v282_v7 = vadd.f32 %v1136_v56, %v174_v55  ;;  %v248_v21 = vld [vmem:[%s893_s26 + $0x182] sm:$0xff]  ;;  %v250_v52 = vld [vmem:[%s893_s26 + $0x19a] sm:$0xff] }
  0xa5   : > { %v627_v10 = vsub.f32 %v595_v1, %v1000_v19  ;;  %v626_v11 = vsub.f32 %v594_v3, %v1009_v26  ;;  %v348_v1 = vadd.f32 %v314_v46, %v312_v48  ;;  %v177_v3 = vld [vmem:[%s893_s26 + $0x188] sm:$0xff]  ;;  %v378_v4 = vadd.f32 %v346_v50, %v314_v46 }
  0xa6   : > { %v508_v15 = vpop.permute.xlu1 %507  ;;  %v503_v16 = vpop.permute.xlu0 %502  ;;  %v381_v23 = vadd.f32 %v349_v6, %v317_v36  ;;  %v215_v30 = vld [vmem:[%s893_s26 + $0x1a1] sm:$0xff] }
  0xa7   : > { %660 = vst.msk [vmem:[%s969_s29 + $0x78] sm:$0xff] %vm644_vm0, %v627_v10  ;;  %659 = vst.msk [vmem:[%s969_s29 + $0x70] sm:$0xff] %vm644_vm0, %v626_v11  ;;  %v597_v19 = vmul.f32 %v508_v15, %v373_v61  ;;  %v596_v26 = vmul.f32 %v503_v16, %v372_v62  ;;  %v247_v61 = vld [vmem:[%s893_s26 + $0x172] sm:$0xff]  ;;  %v1152_v10 = vld [vmem:[%s893_s26 + $0x181] sm:$0xff]  ;;  %v351_v16 = vadd.f32 %v317_v36, %v315_v33 }
  0xa8   : > { %v319_v11 = vadd.f32 %v283_v54, %v247_v61  ;;  %v251_v50 = vld [vmem:[%s893_s26 + $0x1a2] sm:$0xff] }
  0xa9   : > { %v629_v31 = vsub.f32 %v597_v19, %v1018_v43  ;;  %v628_v32 = vsub.f32 %v596_v26, %v1027_v51  ;;  %v280_v43 = vadd.f32 %v1116_v29, %v172_v27  ;;  %v284_v19 = vadd.f32 %v1152_v10, %v176_v8  ;;  %v179_v27 = vld [vmem:[%s893_s26 + $0x1a0] sm:$0xff] }
  0xaa   : > { %v518_v41 = vpop.permute.xlu1 %517  ;;  %v513_v42 = vpop.permute.xlu0 %512  ;;  %v318_v26 = vadd.f32 %v282_v7, %v246_v12  ;;  %v383_v37 = vadd.f32 %v351_v16, %v319_v11 }
  0xab   : > { %662 = vst.msk [vmem:[%s969_s29 + $0x88] sm:$0xff] %vm644_vm0, %v629_v31  ;;  %661 = vst.msk [vmem:[%s969_s29 + $0x80] sm:$0xff] %vm644_vm0, %v628_v32  ;;  %v599_v51 = vmul.f32 %v518_v41, %v375_v17  ;;  %v598_v47 = vmul.f32 %v513_v42, %v374_v20  ;;  %v316_v13 = vadd.f32 %v280_v43, %v244_v53  ;;  %v178_v31 = vld [vmem:[%s893_s26 + $0x198] sm:$0xff] }
  0xac   : > { %v285_v17 = vadd.f32 %v1143_v0, %v177_v3  ;;  %v214_v32 = vld [vmem:[%s893_s26 + $0x199] sm:$0xff]  ;;  %v320_v38 = vadd.f32 %v284_v19, %v248_v21 }
  0xad   : > { %v631_v57 = vsub.f32 %v599_v51, %v1040_v2  ;;  %v630_v58 = vsub.f32 %v598_v47, %v1044_v5  ;;  %v380_v25 = vadd.f32 %v348_v1, %v316_v13  ;;  %v350_v20 = vadd.f32 %v316_v13, %v314_v46 }
  0xae   : > { %v528_v62 = vpop.permute.xlu1 %527  ;;  %v523_v35 = vpop.permute.xlu0 %522  ;;  %v321_v41 = vadd.f32 %v285_v17, %v249_v49  ;;  %v352_v43 = vadd.f32 %v318_v26, %v316_v13  ;;  %v287_v51 = vadd.f32 %v215_v30, %v179_v27  ;;  %v354_v13 = vadd.f32 %v320_v38, %v318_v26 }
  0xaf   : > { %664 = vst.msk [vmem:[%s969_s29 + $0x98] sm:$0xff] %vm644_vm0, %v631_v57  ;;  %663 = vst.msk [vmem:[%s969_s29 + $0x90] sm:$0xff] %vm644_vm0, %v630_v58  ;;  %v601_v2 = vmul.f32 %v528_v62, %v377_v40  ;;  %v600_v5 = vmul.f32 %v523_v35, %v376_v44  ;;  %v353_v44 = vadd.f32 %v319_v11, %v317_v36 }
  0xb0   : > { %v323_v61 = vadd.f32 %v287_v51, %v251_v50  ;;  %v355_v62 = vadd.f32 %v321_v41, %v319_v11 }
  0xb1   : > { %v633_v14 = vsub.f32 %v601_v2, %v1059_v24  ;;  %v632_v15 = vsub.f32 %v600_v5, %v1063_v28  ;;  %v385_v58 = vadd.f32 %v353_v44, %v321_v41 }
  0xb2   : > { %v538_v18 = vpop.permute.xlu1 %537  ;;  %v533_v48 = vpop.permute.xlu0 %532 }
  0xb3   : > { %666 = vst.msk [vmem:[%s969_s29 + $0xa8] sm:$0xff] %vm644_vm0, %v633_v14  ;;  %665 = vst.msk [vmem:[%s969_s29 + $0xa0] sm:$0xff] %vm644_vm0, %v632_v15  ;;  %v603_v24 = vmul.f32 %v538_v18, %v379_v59  ;;  %v602_v28 = vmul.f32 %v533_v48, %v378_v4  ;;  %v384_v59 = vadd.f32 %v352_v43, %v320_v38 }
  0xb4   : > { %v387_v4 = vadd.f32 %v355_v62, %v323_v61 }
  0xb5   : > { %v635_v33 = vsub.f32 %v603_v24, %v1070_v60  ;;  %v634_v34 = vsub.f32 %v602_v28, %v1074_v45  ;;  %v382_v60 = vadd.f32 %v350_v20, %v318_v26  ;;  %v286_v45 = vadd.f32 %v214_v32, %v178_v31 }
  0xb6   : > { %v548_v42 = vpop.permute.xlu1 %547  ;;  %v543_v40 = vpop.permute.xlu0 %542 }
  0xb7   : > { %668 = vst.msk [vmem:[%s969_s29 + $0xb8] sm:$0xff] %vm644_vm0, %v635_v33  ;;  %667 = vst.msk [vmem:[%s969_s29 + $0xb0] sm:$0xff] %vm644_vm0, %v634_v34  ;;  %v605_v47 = vmul.f32 %v548_v42, %v381_v23  ;;  %v604_v46 = vmul.f32 %v543_v40, %v380_v25  ;;  %v322_v6 = vadd.f32 %v286_v45, %v250_v52 }
  0xb9   : > { %v637_v53 = vsub.f32 %v605_v47, %v1090_v63  ;;  %v636_v54 = vsub.f32 %v604_v46, %v1099_v9  ;;  %v386_v7 = vadd.f32 %v354_v13, %v322_v6 }
  0xba   : > { %v558_v55 = vpop.permute.xlu1 %557  ;;  %v553_v57 = vpop.permute.xlu0 %552 }
  0xbb   : > { %670 = vst.msk [vmem:[%s969_s29 + $0xc8] sm:$0xff] %vm644_vm0, %v637_v53  ;;  %669 = vst.msk [vmem:[%s969_s29 + $0xc0] sm:$0xff] %vm644_vm0, %v636_v54  ;;  %v607_v35 = vmul.f32 %v558_v55, %v383_v37  ;;  %v606_v36 = vmul.f32 %v553_v57, %v382_v60 }
  0xbd   : > { %v639_v63 = vsub.f32 %v607_v35, %v1112_v22  ;;  %v638_v9 = vsub.f32 %v606_v36, %v1116_v29 }
  0xbe   : > { %v568_v1 = vpop.permute.xlu1 %567  ;;  %v563_v3 = vpop.permute.xlu0 %562 }
  0xbf   : > { %672 = vst.msk [vmem:[%s969_s29 + $0xd8] sm:$0xff] %vm644_vm0, %v639_v63  ;;  %671 = vst.msk [vmem:[%s969_s29 + $0xd0] sm:$0xff] %vm644_vm0, %v638_v9  ;;  %v609_v2 = vmul.f32 %v568_v1, %v385_v58  ;;  %v608_v5 = vmul.f32 %v563_v3, %v384_v59 }
  0xc1   : > { %v641_v8 = vsub.f32 %v609_v2, %v1123_v39  ;;  %v640_v11 = vsub.f32 %v608_v5, %v1136_v56 }
  0xc2   : > { %v578_v12 = vpop.permute.xlu1 %577  ;;  %v573_v22 = vpop.permute.xlu0 %572 }
  0xc3   : > { %674 = vst.msk [vmem:[%s969_s29 + $0xe8] sm:$0xff] %vm644_vm0, %v641_v8  ;;  %673 = vst.msk [vmem:[%s969_s29 + $0xe0] sm:$0xff] %vm644_vm0, %v640_v11  ;;  %v611_v29 = vmul.f32 %v578_v12, %v387_v4  ;;  %v610_v14 = vmul.f32 %v573_v22, %v386_v7 }
  0xc5   : > { %v643_v15 = vsub.f32 %v611_v29, %v1143_v0  ;;  %v642_v16 = vsub.f32 %v610_v14, %v1152_v10 }
  0xc7   : > { %676 = vst.msk [vmem:[%s969_s29 + $0xf8] sm:$0xff] %vm644_vm0, %v643_v15  ;;  %675 = vst.msk [vmem:[%s969_s29 + $0xf0] sm:$0xff] %vm644_vm0, %v642_v16 }
  0xc8 PF: > { %s12_s9 = sadd.s32 1, %s761_s9  }
  0xc9   : > { %p9_p4 = scmp.ge.s32.totalorder %s12_s9, 4  }
  0xcb   :  { %11 = sbr.rel (!%p9_p4) target bundleno = 1 (0x1), region = 58 }

</bundles_post_ra>
